<compile_context>
chip_gen: v7x
topology: tpu7x:2x2x1
jax: 0.10.0
libtpu: 0.0.40
codegen_flags: <defaults>
</compile_context>

<pallas_src>
import functools
import math
import numpy as np
import jax
import jax.numpy as jnp
from jax.experimental import pallas as pl
from jax.experimental.pallas import tpu as pltpu


_MXU_DTYPE = jnp.bfloat16          # MXU-boundary dtype; accumulation is always f32
_ACT_DTYPE = jnp.bfloat16          # inter-kernel activation dtype (residual stream stays f32)
_LN_EPS = 1e-5
_BN_EPS = 1e-5
_CHAMFER_SENTINEL = 1.0e4          # padded Q columns -> huge distance, never wins a row-min


def _round_up(x, m):
    return ((x + m - 1) // m) * m


def _tpu_arch_defaults():
    # v4/v5/v6 have 128 MiB VMEM per core -> big row tiles; v7x has 64 MiB -> stay conservative.
    try:
        kind = jax.devices()[0].device_kind.lower()
    except Exception:
        kind = ""
    if "v7" in kind:
        return 512, 32 * 1024 * 1024
    if any(t in kind for t in ("v4", "v5", "v6")):
        return 1024, 96 * 1024 * 1024
    return 512, 32 * 1024 * 1024


_TILE_M_DEFAULT, _VMEM_LIMIT = _tpu_arch_defaults()


def _probe_buffered():
    """One tiny compile to check that pipeline_mode=pl.Buffered(1) is supported; else fall back."""
    if not hasattr(pl, "Buffered"):
        return False
    try:
        def _copy(x_ref, o_ref):
            o_ref[...] = x_ref[...]
        x = jnp.zeros((8, 128), jnp.float32)
        y = pl.pallas_call(
            _copy,
            out_shape=jax.ShapeDtypeStruct((16, 128), jnp.float32),
            grid=(2,),
            in_specs=[pl.BlockSpec((8, 128), lambda i: (0, 0),
                                   pipeline_mode=pl.Buffered(1))],
            out_specs=pl.BlockSpec((8, 128), lambda i: (i, 0)),
            compiler_params=pltpu.CompilerParams(vmem_limit_bytes=_VMEM_LIMIT),
        )(x)
        jax.block_until_ready(y)
        return True
    except Exception:
        return False


_BUFFERED_OK = _probe_buffered()


def _const_spec(shape):
    """BlockSpec for a block whose index never changes across the grid (weights, bias, scales)."""
    idx = lambda i: (0,) * len(shape)
    if _BUFFERED_OK:
        return pl.BlockSpec(shape, idx, pipeline_mode=pl.Buffered(1))
    return pl.BlockSpec(shape, idx)


def _gelu_erf(x):
    # torch nn.GELU() default is the erf form.  erf is evaluated with the Abramowitz & Stegun
    # 7.1.26 polynomial (|err| < 1.5e-7) built only from exp / mul / add (EUP + VPU).
    a1, a2, a3, a4, a5 = 0.254829592, -0.284496736, 1.421413741, -1.453152027, 1.061405429
    p = 0.3275911
    z = x * 0.7071067811865476
    sgn = jnp.where(z >= 0.0, 1.0, -1.0)
    az = jnp.abs(z)
    t = 1.0 / (1.0 + p * az)
    poly = ((((a5 * t + a4) * t + a3) * t + a2) * t + a1) * t
    erf = sgn * (1.0 - poly * jnp.exp(-az * az))
    return 0.5 * x * (1.0 + erf)


# ----------------------------------------------------------------------------
# Fused linear kernel:
#   [pre-LN | pre-BN(affine)+ReLU] -> matmul(+ group-broadcast extra matmul)(+bias) -> [ReLU|GELU]
# Optional extra outputs: masked sum / sum-of-squares (BatchNorm stats) and per-group max.
# ----------------------------------------------------------------------------

def _make_linear_kernel(*, pre, act, has_bias, with_stats, has_extra, extra_rep,
                        gmax_n, emit_rows, small_k, rows_total, tile_m):
    def kernel(*refs):
        it = iter(refs)
        x_ref = next(it)
        s_ref = t_ref = None
        if pre is not None:
            s_ref = next(it)
            t_ref = next(it)
        ex_ref = next(it) if has_extra else None
        w_ref = next(it)
        ew_ref = next(it) if has_extra else None
        b_ref = next(it) if has_bias else None
        o_ref = next(it) if emit_rows else None
        sum_ref = sq_ref = None
        if with_stats:
            sum_ref = next(it)
            sq_ref = next(it)
        gm_ref = next(it) if gmax_n is not None else None

        xin = x_ref[...]
        if pre == 'ln':
            x = xin.astype(jnp.float32)
            mu = jnp.mean(x, axis=-1, keepdims=True)
            var = jnp.mean(jnp.square(x - mu), axis=-1, keepdims=True)
            x = (x - mu) * jax.lax.rsqrt(var + _LN_EPS) * s_ref[...] + t_ref[...]
        elif pre == 'affine_relu':      # BatchNorm folded to scale/shift, fused with ReLU
            x = jnp.maximum(xin.astype(jnp.float32) * s_ref[...] + t_ref[...], 0.0)
        else:
            x = xin

        if small_k:
            # tiny contraction dim (K=3): broadcast FMAs on the VPU, skip the MXU entirely
            xf = x.astype(jnp.float32)
            w = w_ref[...].astype(jnp.float32)
            y = xf[:, 0:1] * w[0:1, :]
            for kk in range(1, w.shape[0]):
                y = y + xf[:, kk:kk + 1] * w[kk:kk + 1, :]
        else:
            y = jnp.dot(x.astype(_MXU_DTYPE), w_ref[...],
                        preferred_element_type=jnp.float32)

        if has_extra:
            # per-group features: one matmul per group row, repeated over the group's rows
            e = jnp.dot(ex_ref[...], ew_ref[...], preferred_element_type=jnp.float32)
            ng = e.shape[0]
            e = jnp.broadcast_to(e[:, None, :], (ng, extra_rep, e.shape[1]))
            y = y + e.reshape(ng * extra_rep, e.shape[-1])

        if has_bias:
            y = y + b_ref[...]
        if act == 'relu':
            y = jnp.maximum(y, 0.0)
        elif act == 'gelu':
            y = _gelu_erf(y)

        if emit_rows:
            o_ref[...] = y.astype(o_ref.dtype)

        if with_stats:
            i = pl.program_id(0)
            rid = jax.lax.broadcasted_iota(jnp.int32, (y.shape[0], 1), 0) + i * tile_m
            ys = jnp.where(rid < rows_total, y, 0.0)       # mask padded rows
            sum_ref[0] = jnp.sum(ys, axis=0, keepdims=True)
            sq_ref[0] = jnp.sum(ys * y, axis=0, keepdims=True)

        if gmax_n is not None:
            ng = y.shape[0] // gmax_n
            gm = jnp.max(y.reshape(ng, gmax_n, y.shape[1]), axis=1)
            gm_ref[...] = gm.astype(gm_ref.dtype)
    return kernel


def _choose_tiles(m, group_n, tile_m):
    """Pick (padded_rows, row_tile) so every block is legal and rows pad to a whole tile."""
    if group_n is None:
        mp = _round_up(m, 8)
        tm = min(tile_m, mp)
        mp = _round_up(mp, tm)
        return mp, tm
    step = 8 * group_n
    if step % 16:
        step *= 2                                  # keep bf16-tiled sub-blocks legal
    align = (8 * group_n) // math.gcd(8, group_n)  # lcm(8, group_n)
    mp = _round_up(m, align)
    if tile_m >= mp:
        return mp, mp                              # single tile, block == full array
    tm = max((tile_m // step) * step, step)
    mp = _round_up(mp, tm)
    return mp, tm


def fused_linear(x, w, b=None, *, pre=None, pre_scale=None, pre_shift=None, act=None,
                 with_stats=False, group_n=None, emit_group_max=False, gmax_dtype=None,
                 extra_x=None, extra_w=None, emit_rows=True,
                 out_dtype=jnp.float32, tile_m=None):
    """y = post_act( pre_op(x) @ w [+ repeat(extra_x @ extra_w)] + b )

    Returns, in order: [rows], [mean, var] (with_stats), [per-group max] (emit_group_max)."""
    m, k = x.shape
    n_out = w.shape[1]
    small_k = k < 8
    has_extra = extra_x is not None
    assert emit_rows or with_stats or emit_group_max
    tile_m = _TILE_M_DEFAULT if tile_m is None else tile_m

    needs_groups = (group_n is not None) and (emit_group_max or has_extra)
    mp, tm = _choose_tiles(m, group_n if needs_groups else None, tile_m)
    grid = mp // tm
    x_in = x if mp == m else jnp.pad(x, ((0, mp - m), (0, 0)))

    kernel = _make_linear_kernel(
        pre=pre, act=act, has_bias=b is not None, with_stats=with_stats,
        has_extra=has_extra, extra_rep=group_n if has_extra else None,
        gmax_n=group_n if emit_group_max else None, emit_rows=emit_rows,
        small_k=small_k, rows_total=m, tile_m=tm)

    in_specs = [pl.BlockSpec((tm, k), lambda i: (i, 0))]
    operands = [x_in]
    if pre is not None:
        in_specs += [_const_spec((1, k)), _const_spec((1, k))]
        operands += [pre_scale.reshape(1, k).astype(jnp.float32),
                     pre_shift.reshape(1, k).astype(jnp.float32)]
    if has_extra:
        ge = mp // group_n
        tge = tm // group_n
        ex = extra_x.astype(_MXU_DTYPE)
        if ex.shape[0] != ge:
            ex = jnp.pad(ex, ((0, ge - ex.shape[0]), (0, 0)))
        in_specs.append(pl.BlockSpec((tge, ex.shape[1]), lambda i: (i, 0)))
        operands.append(ex)
    # weights are cast to bf16 in the wrapper: halves HBM/VMEM on the weight stream
    in_specs.append(_const_spec((k, n_out)))
    operands.append(w if small_k else w.astype(_MXU_DTYPE))
    if has_extra:
        in_specs.append(_const_spec((extra_w.shape[0], n_out)))
        operands.append(extra_w.astype(_MXU_DTYPE))
    if b is not None:
        in_specs.append(_const_spec((1, n_out)))
        operands.append(b.reshape(1, n_out).astype(jnp.float32))

    out_shapes, out_specs = [], []
    if emit_rows:
        out_shapes.append(jax.ShapeDtypeStruct((mp, n_out), out_dtype))
        out_specs.append(pl.BlockSpec((tm, n_out), lambda i: (i, 0)))
    if with_stats:
        out_shapes += [jax.ShapeDtypeStruct((grid, 1, n_out), jnp.float32)] * 2
        out_specs += [pl.BlockSpec((1, 1, n_out), lambda i: (i, 0, 0))] * 2
    if emit_group_max:
        gd = out_dtype if gmax_dtype is None else gmax_dtype
        out_shapes.append(jax.ShapeDtypeStruct((mp // group_n, n_out), gd))
        out_specs.append(pl.BlockSpec((tm // group_n, n_out), lambda i: (i, 0)))

    res = list(pl.pallas_call(
        kernel,
        out_shape=tuple(out_shapes),
        grid=(grid,),
        in_specs=in_specs,
        out_specs=tuple(out_specs),
        compiler_params=pltpu.CompilerParams(
            dimension_semantics=("parallel",), vmem_limit_bytes=_VMEM_LIMIT),
    )(*operands))

    outs = []
    if emit_rows:
        y = res.pop(0)
        outs.append(y[:m] if mp != m else y)
    if with_stats:
        ssum = jnp.sum(res.pop(0), axis=(0, 1))
        sqsum = jnp.sum(res.pop(0), axis=(0, 1))
        mean = ssum / m
        var = jnp.maximum(sqsum / m - mean * mean, 0.0)    # biased var (PyTorch training BN)
        outs += [mean, var]
    if emit_group_max:
        g = res.pop(0)
        ngrp = m // group_n
        outs.append(g[:ngrp] if g.shape[0] != ngrp else g)
    return outs[0] if len(outs) == 1 else tuple(outs)


# ----------------------------------------------------------------------------
# Multi-head self-attention: per-head-contiguous qkv layout, one lane-dense output store
# ----------------------------------------------------------------------------

def _attention_kernel(qkv_ref, o_ref, *, num_heads, dh, scale):
    qkv = qkv_ref[0]                                       # (N, 3C) bf16, [q_h|k_h|v_h] per head
    outs = []
    for h in range(num_heads):                             # static unroll over heads
        base = h * 3 * dh
        q = qkv[:, base:base + dh]
        k = qkv[:, base + dh:base + 2 * dh]
        v = qkv[:, base + 2 * dh:base + 3 * dh]
        s = jax.lax.dot_general(q, k, (((1,), (1,)), ((), ())),
                                preferred_element_type=jnp.float32) * scale
        s = s - jnp.max(s, axis=-1, keepdims=True)
        p = jnp.exp(s)
        p = p * pl.reciprocal(jnp.sum(p, axis=-1, keepdims=True), approx=True)
        outs.append(jnp.dot(p.astype(v.dtype), v, preferred_element_type=jnp.float32))
    # TODO(synk): for larger head counts / Dh, batch the per-head dots so the MXU N/K dims reach 256.
    o_ref[0] = jnp.concatenate(outs, axis=-1).astype(o_ref.dtype)   # single lane-dense store


def multihead_attention(qkv, num_heads):
    """qkv: (B, N, 3C) channels-last, per-head-contiguous layout -> (B, N, C)."""
    B, N, C3 = qkv.shape
    C = C3 // 3
    dh = C // num_heads
    return pl.pallas_call(
        functools.partial(_attention_kernel, num_heads=num_heads, dh=dh, scale=dh ** -0.5),
        out_shape=jax.ShapeDtypeStruct((B, N, C), _ACT_DTYPE),
        grid=(B,),
        in_specs=[pl.BlockSpec((1, N, C3), lambda b: (b, 0, 0))],
        out_specs=pl.BlockSpec((1, N, C), lambda b: (b, 0, 0)),
        compiler_params=pltpu.CompilerParams(
            dimension_semantics=("parallel",), vmem_limit_bytes=_VMEM_LIMIT),
    )(qkv)


def _reorder_qkv_w(w, num_heads):
    """Permute qkv weight columns from [q(C)|k(C)|v(C)] to per-head-contiguous [q_h|k_h|v_h]."""
    C3 = w.shape[1]
    C = C3 // 3
    dh = C // num_heads
    cols = []
    for h in range(num_heads):
        cols += list(range(h * dh, (h + 1) * dh))
        cols += list(range(C + h * dh, C + (h + 1) * dh))
        cols += list(range(2 * C + h * dh, 2 * C + (h + 1) * dh))
    return w[:, np.array(cols)]


# ----------------------------------------------------------------------------
# Streaming chamfer-L2: grid over batch, Q consumed in lane-aligned tiles with a running min
# ----------------------------------------------------------------------------

def _chamfer_kernel(x_ref, yt_ref, o_ref, *, q_tiles, tq, q_real):
    x = x_ref[0].astype(jnp.float32)                       # (P, 3)
    P = x.shape[0]
    xx = jnp.sum(x * x, axis=-1, keepdims=True)            # (P, 1)

    def body(t, carry):
        col_sum, minx = carry
        start = pl.multiple_of(t * tq, tq)
        yt = yt_ref[0, :, pl.ds(start, tq)].astype(jnp.float32)       # (3, tq)
        yy = jnp.sum(yt * yt, axis=0, keepdims=True)                  # (1, tq)
        # K=3 contraction via VPU FMAs instead of a wasteful MXU dot
        xy = x[:, 0:1] * yt[0:1, :] + x[:, 1:2] * yt[1:2, :] + x[:, 2:3] * yt[2:3, :]
        d = jnp.maximum(xx + yy - 2.0 * xy, 0.0)                      # (P, tq)
        # padded columns carry a huge sentinel coordinate -> no (P, tq) validity select needed
        minx = jnp.minimum(minx, jnp.min(d, axis=1, keepdims=True))
        col_idx = jax.lax.broadcasted_iota(jnp.int32, (1, tq), 1) + start
        col_min = jnp.min(d, axis=0, keepdims=True)                   # (1, tq)
        col_sum = col_sum + jnp.sum(jnp.where(col_idx < q_real, col_min, 0.0))
        return col_sum, minx

    init = (jnp.float32(0.0), jnp.full((P, 1), jnp.inf, jnp.float32))
    col_sum, minx = jax.lax.fori_loop(0, q_tiles, body, init)
    o_ref[0, 0] = jnp.mean(minx) + col_sum / jnp.float32(q_real)


def chamfer_l2(x, y, tile_q=256):
    """mean_i min_j ||x_i - y_j||^2 + mean_j min_i ||x_i - y_j||^2 (averaged over batch)."""
    B, P, _ = x.shape
    Q = y.shape[1]
    tq = min(tile_q, _round_up(Q, 128))
    qp = _round_up(Q, tq)
    yt = jnp.swapaxes(y, 1, 2)                              # (B, 3, Q): keeps in-kernel math 2-D
    if qp != Q:
        yt = jnp.pad(yt, ((0, 0), (0, 0), (0, qp - Q)), constant_values=_CHAMFER_SENTINEL)
    # TODO(synk): for very large P, also tile P across the grid with a cross-tile col-min scratch.
    out = pl.pallas_call(
        functools.partial(_chamfer_kernel, q_tiles=qp // tq, tq=tq, q_real=Q),
        out_shape=jax.ShapeDtypeStruct((B, 1), jnp.float32),
        grid=(B,),
        in_specs=[pl.BlockSpec((1, P, 3), lambda b: (b, 0, 0)),
                  pl.BlockSpec((1, 3, qp), lambda b: (b, 0, 0))],
        out_specs=pl.BlockSpec((1, 1), lambda b: (b, 0),
                               memory_space=pltpu.MemorySpace.SMEM),
        compiler_params=pltpu.CompilerParams(
            dimension_semantics=("parallel",), vmem_limit_bytes=_VMEM_LIMIT),
    )(x.astype(jnp.float32), yt)
    return jnp.mean(out)


# ----------------------------------------------------------------------------
# Model (plain-JAX glue around the fused kernels)
# ----------------------------------------------------------------------------

def init_params(key, cfg):
    # trunc_normal_(std=0.02) approximated with plain normal * 0.02 (synthetic weights).
    C = cfg['trans_dim']
    keys = iter(jax.random.split(key, 64))

    def lin(fan_in, fan_out):
        return jax.random.normal(next(keys), (fan_in, fan_out), jnp.float32) * 0.02

    params = {
        # Point-MAE Encoder: Conv1d(3,128)-BN-ReLU-Conv1d(128,256); Conv1d(512,512)-BN-ReLU-Conv1d(512,C)
        'enc': {
            'c1_w': lin(3, 128), 'c1_b': jnp.zeros(128), 'bn1_g': jnp.ones(128), 'bn1_b': jnp.zeros(128),
            'c2_w': lin(128, 256), 'c2_b': jnp.zeros(256),
            'c3_w': lin(512, 512), 'c3_b': jnp.zeros(512), 'bn2_g': jnp.ones(512), 'bn2_b': jnp.zeros(512),
            'c4_w': lin(512, C), 'c4_b': jnp.zeros(C),
        },
        # pos_embed: Linear(3,128) -> GELU -> Linear(128, C)
        'pos': {'w1': lin(3, 128), 'b1': jnp.zeros(128), 'w2': lin(128, C), 'b2': jnp.zeros(C)},
        'norm_g': jnp.ones(C), 'norm_b': jnp.zeros(C),
    }
    hidden = C * 4
    blocks = []
    for _ in range(cfg['depth']):
        blocks.append({
            'ln1_g': jnp.ones(C), 'ln1_b': jnp.zeros(C),
            # qkv_bias=False (Point-MAE default); columns permuted once to per-head layout
            # (when porting torch weights, apply the same one-time permutation).
            'qkv_w': _reorder_qkv_w(lin(C, 3 * C), cfg['num_heads']),
            'proj_w': lin(C, C), 'proj_b': jnp.zeros(C),
            'ln2_g': jnp.ones(C), 'ln2_b': jnp.zeros(C),
            'fc1_w': lin(C, hidden), 'fc1_b': jnp.zeros(hidden),
            'fc2_w': lin(hidden, C), 'fc2_b': jnp.zeros(C),
        })
    params['blocks'] = blocks
    out_ch = 3 * int(cfg['num_output'] * (1 - cfg['mask_ratio'])) // cfg['num_group']
    params['inc_w'] = lin(C, out_ch)
    params['inc_b'] = jnp.zeros(out_ch)
    # mask_token and group_divider are defined in the torch module but unused in this forward path.
    return params


def _bn_fold(gamma, beta, mean, var):
    scale = gamma * jax.lax.rsqrt(var + _BN_EPS)
    shift = beta - mean * scale
    return scale, shift


def encoder_forward(p, vis):
    # vis: (B, M, n, 3) visible groups -> (B, M, trans_dim) tokens
    # Training-mode BatchNorm: batch statistics come from the fused conv kernels (masked partial
    # sums reduced globally), so stats stay correct under row tiling.  No running-stats update.
    B, M, n, _ = vis.shape
    x = vis.reshape(B * M * n, 3)
    # conv1 + batch stats (K=3 VPU path)
    y1, m1, v1 = fused_linear(x, p['c1_w'], p['c1_b'], with_stats=True, out_dtype=_ACT_DTYPE)
    s1, t1 = _bn_fold(p['bn1_g'], p['bn1_b'], m1, v1)
    # BN1+ReLU fused into conv2; per-group max emitted by the same kernel (no re-read of f)
    f, g = fused_linear(y1, p['c2_w'], p['c2_b'], pre='affine_relu',
                        pre_scale=s1, pre_shift=t1,
                        group_n=n, emit_group_max=True, out_dtype=_ACT_DTYPE)
    # conv3 on the [global ; local] concat WITHOUT materializing it:
    #   y3 = repeat(g @ c3_w[:256]) + f @ c3_w[256:] + b      (+ batch stats)
    w_top = p['c3_w'][:g.shape[1]]
    w_bot = p['c3_w'][g.shape[1]:]
    y3, m3, v3 = fused_linear(f, w_bot, p['c3_b'], with_stats=True,
                              group_n=n, extra_x=g, extra_w=w_top, out_dtype=_ACT_DTYPE)
    s3, t3 = _bn_fold(p['bn2_g'], p['bn2_b'], m3, v3)
    # BN2+ReLU fused into conv4; final per-group max pool emitted directly (rows never written)
    tokens = fused_linear(y3, p['c4_w'], p['c4_b'], pre='affine_relu',
                          pre_scale=s3, pre_shift=t3,
                          group_n=n, emit_group_max=True, emit_rows=False,
                          out_dtype=_ACT_DTYPE, gmax_dtype=jnp.float32)
    return tokens.reshape(B, M, -1)


def block_forward(bp, x, num_heads):
    # TODO(synk): longer term, fuse the whole block (LN->qkv->attn->proj->res->LN->fc1->GELU->fc2->res)
    # into a single pallas_call so intermediates stay resident in VMEM.
    B, N, C = x.shape
    rows = x.reshape(B * N, C)
    # ln1 fused into qkv matmul; qkv has no bias; bf16 output feeds the attention MXU directly
    qkv = fused_linear(rows, bp['qkv_w'], None, pre='ln',
                       pre_scale=bp['ln1_g'], pre_shift=bp['ln1_b'], out_dtype=_ACT_DTYPE)
    attn = multihead_attention(qkv.reshape(B, N, 3 * C), num_heads)                # (B, N, C) bf16
    attn = fused_linear(attn.reshape(B * N, C), bp['proj_w'], bp['proj_b'],
                        out_dtype=_ACT_DTYPE)
    x = x + attn.reshape(B, N, C).astype(jnp.float32)
    rows = x.reshape(B * N, C)
    # ln2 + fc1 + GELU fused; fc2 separate
    h = fused_linear(rows, bp['fc1_w'], bp['fc1_b'], pre='ln',
                     pre_scale=bp['ln2_g'], pre_shift=bp['ln2_b'], act='gelu',
                     out_dtype=_ACT_DTYPE)
    h = fused_linear(h, bp['fc2_w'], bp['fc2_b'], out_dtype=_ACT_DTYPE)
    x = x + h.reshape(B, N, C).astype(jnp.float32)
    return x


def point_transformer_forward(params, neighborhood, center, mask_np, cfg):
    B = mask_np.shape[0]
    C3 = neighborhood.shape[-1]
    vis = neighborhood.reshape(B, -1, cfg['group_size'], C3)
    tokens = encoder_forward(params['enc'], vis)                                   # (B, M, C)
    idx_b, idx_g = np.nonzero(~mask_np)                    # static index version of center[~mask]
    vis_center = center[idx_b, idx_g].reshape(B, -1, 3)
    pos = fused_linear(vis_center.reshape(-1, 3), params['pos']['w1'],
                       params['pos']['b1'], act='gelu', out_dtype=_ACT_DTYPE)      # Linear(3,128)+GELU
    pos = fused_linear(pos, params['pos']['w2'], params['pos']['b2'])              # f32 (residual add)
    pos = pos.reshape(B, -1, cfg['trans_dim'])
    x = tokens
    for bp in params['blocks']:                                                    # x = block(x + pos)
        x = block_forward(bp, x + pos, cfg['num_heads'])
    # final LayerNorm (self.norm) is fused into the increase_dim matmul downstream
    return x


def encoder_module_forward(params, pts, neighborhood, center, mask_np, msk_pc, cfg):
    neighborhood = neighborhood.astype(jnp.float32)
    center = center.astype(jnp.float32)
    x_vis = point_transformer_forward(params, neighborhood, center, mask_np, cfg)  # (B, M, C) pre-norm
    B, M, C = x_vis.shape
    # self.neighborhood(...) output (vis_pc) is not used by the loss; omitted.
    # increase_dim (1x1 Conv1d) fused with the final LayerNorm (self.norm) on channels-last rows.
    rebuild = fused_linear(x_vis.reshape(B * M, C), params['inc_w'], params['inc_b'],
                           pre='ln', pre_scale=params['norm_g'], pre_shift=params['norm_b'])
    rebuild = rebuild.reshape(B, -1, 3)
    full = jnp.concatenate([rebuild, msk_pc.astype(jnp.float32)], axis=1)
    loss = chamfer_l2(full, pts.astype(jnp.float32))                               # config.loss == 'cdl2'
    return loss


# ----------------------------------------------------------------------------

if __name__ == "__main__":
    cfg = dict(
        trans_dim=32, depth=2, num_heads=4,
        group_size=8, num_group=4, num_output=64,
        mask_ratio=0.5, drop_path_rate=0.0, loss='cdl2',
    )
    B = 2
    G, gs = cfg['num_group'], cfg['group_size']
    n_vis = int(G * (1 - cfg['mask_ratio']))               # visible groups per sample

    key = jax.random.PRNGKey(0)
    k_pts, k_nb, k_ct, k_msk, k_par = jax.random.split(key, 5)

    mask_np = np.zeros((B, G), dtype=bool)
    mask_np[:, n_vis:] = True                              # last groups masked, same count per sample

    pts = jax.random.normal(k_pts, (B, cfg['num_output'], 3), jnp.float32)
    neighborhood = jax.random.normal(k_nb, (B, n_vis * gs, 3), jnp.float32) * 0.05
    center = jax.random.normal(k_ct, (B, G, 3), jnp.float32)
    msk_pc = jax.random.normal(k_msk, (B, (G - n_vis) * gs, 3), jnp.float32)

    params = init_params(k_par, cfg)

    loss = encoder_module_forward(params, pts, neighborhood, center, mask_np, msk_pc, cfg)
    jax.block_until_ready(loss)
    print("KERNEL_OK")
</pallas_src>

<mosaic_0001>
module attributes {stable_mosaic.version = 11 : i64} {
  func.func @_copy(%arg0: i32, %arg1: memref<8x128xf32, #tpu.memory_space<vmem>>, %arg2: memref<8x128xf32, #tpu.memory_space<vmem>>) attributes {dimension_semantics = [#tpu.dimension_semantics<arbitrary>], iteration_bounds = array<i64: 2>, scalar_prefetch = 0 : i64, scratch_operands = 0 : i64, tpu.core_type = #tpu.core_type<tc>, window_params = [{pipeline_mode = #tpu.pipeline_mode<synchronous>, transform_indices = @transform_0, window_bounds = array<i64: 8, 128>}, {transform_indices = @transform_1, window_bounds = array<i64: 8, 128>}]} {
    %c0 = arith.constant 0 : index
    %c0_0 = arith.constant 0 : index
    %0 = vector.load %arg1[%c0, %c0_0] : memref<8x128xf32, #tpu.memory_space<vmem>>, vector<8x128xf32>
    %c0_1 = arith.constant 0 : index
    %c0_2 = arith.constant 0 : index
    %1 = vector.load %arg2[%c0_1, %c0_2] : memref<8x128xf32, #tpu.memory_space<vmem>>, vector<8x128xf32>
    tpu.vector_store %arg2[%c0_1, %c0_2], %0 {strides = array<i32>} : memref<8x128xf32, #tpu.memory_space<vmem>>, vector<8x128xf32>,
    return
  }
  func.func @transform_0(%arg0: i32) -> (i32, i32) {
    %c0_i32 = arith.constant 0 : i32
    %c0_i32_0 = arith.constant 0 : i32
    %c0_i32_1 = arith.constant 0 : i32
    return %c0_i32, %c0_i32_0 : i32, i32
  }
  func.func @transform_1(%arg0: i32) -> (i32, i32) {
    %c0_i32 = arith.constant 0 : i32
    %c0_i32_0 = arith.constant 0 : i32
    return %arg0, %c0_i32 : i32, i32
  }
}

module attributes {stable_mosaic.version = 11 : i64} {
  func.func @kernel(%arg0: i32, %arg1: memref<32x3xf32, #tpu.memory_space<vmem>>, %arg2: memref<3x128xf32, #tpu.memory_space<vmem>>, %arg3: memref<1x128xf32, #tpu.memory_space<vmem>>, %arg4: memref<32x128xbf16, #tpu.memory_space<vmem>>, %arg5: memref<1x1x128xf32, #tpu.memory_space<vmem>>, %arg6: memref<1x1x128xf32, #tpu.memory_space<vmem>>) attributes {dimension_semantics = [#tpu.dimension_semantics<parallel>], iteration_bounds = array<i64: 1>, scalar_prefetch = 0 : i64, scratch_operands = 0 : i64, tpu.core_type = #tpu.core_type<tc>, window_params = [{transform_indices = @transform_0, window_bounds = array<i64: 32, 3>}, {pipeline_mode = #tpu.pipeline_mode<synchronous>, transform_indices = @transform_1, window_bounds = array<i64: 3, 128>}, {pipeline_mode = #tpu.pipeline_mode<synchronous>, transform_indices = @transform_2, window_bounds = array<i64: 1, 128>}, {transform_indices = @transform_3, window_bounds = array<i64: 32, 128>}, {transform_indices = @transform_4, window_bounds = array<i64: 1, 1, 128>}, {transform_indices = @transform_5, window_bounds = array<i64: 1, 1, 128>}]} {
    %c0 = arith.constant 0 : index
    %c0_0 = arith.constant 0 : index
    %0 = vector.load %arg1[%c0, %c0_0] : memref<32x3xf32, #tpu.memory_space<vmem>>, vector<32x3xf32>
    %c0_1 = arith.constant 0 : index
    %c0_2 = arith.constant 0 : index
    %1 = vector.load %arg2[%c0_1, %c0_2] : memref<3x128xf32, #tpu.memory_space<vmem>>, vector<3x128xf32>
    %2 = vector.extract_strided_slice %0 {offsets = [0, 0], sizes = [32, 1], strides = [1, 1]} : vector<32x3xf32> to vector<32x1xf32>
    %3 = vector.extract_strided_slice %1 {offsets = [0, 0], sizes = [1, 128], strides = [1, 1]} : vector<3x128xf32> to vector<1x128xf32>
    %4 = vector.broadcast %2 : vector<32x1xf32> to vector<32x128xf32>
    %5 = vector.broadcast %3 : vector<1x128xf32> to vector<32x128xf32>
    %6 = arith.mulf %4, %5 : vector<32x128xf32>
    %7 = vector.extract_strided_slice %0 {offsets = [0, 1], sizes = [32, 1], strides = [1, 1]} : vector<32x3xf32> to vector<32x1xf32>
    %8 = vector.extract_strided_slice %1 {offsets = [1, 0], sizes = [1, 128], strides = [1, 1]} : vector<3x128xf32> to vector<1x128xf32>
    %9 = vector.broadcast %7 : vector<32x1xf32> to vector<32x128xf32>
    %10 = vector.broadcast %8 : vector<1x128xf32> to vector<32x128xf32>
    %11 = arith.mulf %9, %10 : vector<32x128xf32>
    %12 = arith.addf %6, %11 : vector<32x128xf32>
    %13 = vector.extract_strided_slice %0 {offsets = [0, 2], sizes = [32, 1], strides = [1, 1]} : vector<32x3xf32> to vector<32x1xf32>
    %14 = vector.extract_strided_slice %1 {offsets = [2, 0], sizes = [1, 128], strides = [1, 1]} : vector<3x128xf32> to vector<1x128xf32>
    %15 = vector.broadcast %13 : vector<32x1xf32> to vector<32x128xf32>
    %16 = vector.broadcast %14 : vector<1x128xf32> to vector<32x128xf32>
    %17 = arith.mulf %15, %16 : vector<32x128xf32>
    %18 = arith.addf %12, %17 : vector<32x128xf32>
    %c0_3 = arith.constant 0 : index
    %c0_4 = arith.constant 0 : index
    %19 = vector.load %arg3[%c0_3, %c0_4] : memref<1x128xf32, #tpu.memory_space<vmem>>, vector<1x128xf32>
    %20 = vector.broadcast %19 : vector<1x128xf32> to vector<32x128xf32>
    %21 = arith.addf %18, %20 : vector<32x128xf32>
    %22 = arith.truncf %21 : vector<32x128xf32> to vector<32x128xbf16>
    %c0_5 = arith.constant 0 : index
    %c0_6 = arith.constant 0 : index
    %23 = vector.load %arg4[%c0_5, %c0_6] : memref<32x128xbf16, #tpu.memory_space<vmem>>, vector<32x128xbf16>
    tpu.vector_store %arg4[%c0_5, %c0_6], %22 {strides = array<i32>} : memref<32x128xbf16, #tpu.memory_space<vmem>>, vector<32x128xbf16>,
    %24 = tpu.iota {dimensions = array<i32: 0>} : vector<32x1xi32>
    %c32_i32 = arith.constant 32 : i32
    %25 = arith.muli %arg0, %c32_i32 : i32
    %26 = vector.broadcast %25 : i32 to vector<32x1xi32>
    %27 = arith.addi %24, %26 : vector<32x1xi32>
    %c32_i32_7 = arith.constant 32 : i32
    %28 = vector.broadcast %c32_i32_7 : i32 to vector<32x1xi32>
    %29 = arith.cmpi slt, %27, %28 : vector<32x1xi32>
    %cst = arith.constant 0.000000e+00 : f32
    %30 = vector.shape_cast %29 : vector<32x1xi1> to vector<32x1xi1>
    %31 = vector.broadcast %30 : vector<32x1xi1> to vector<32x128xi1>
    %32 = vector.broadcast %cst : f32 to vector<32x128xf32>
    %33 = arith.select %31, %21, %32 : vector<32x128xi1>, vector<32x128xf32>
    %cst_8 = arith.constant dense<0.000000e+00> : vector<128xf32>
    %34 = vector.multi_reduction <add>, %33, %cst_8 [0] : vector<32x128xf32> to vector<128xf32>
    %35 = vector.shape_cast %34 : vector<128xf32> to vector<1x128xf32>
    %c0_9 = arith.constant 0 : index
    %c0_10 = arith.constant 0 : index
    %c0_11 = arith.constant 0 : index
    %36 = vector.load %arg5[%c0_9, %c0_10, %c0_11] : memref<1x1x128xf32, #tpu.memory_space<vmem>>, vector<1x1x128xf32>
    %37 = vector.shape_cast %36 : vector<1x1x128xf32> to vector<1x128xf32>
    %38 = vector.shape_cast %35 : vector<1x128xf32> to vector<1x1x128xf32>
    tpu.vector_store %arg5[%c0_9, %c0_10, %c0_11], %38 {strides = array<i32>} : memref<1x1x128xf32, #tpu.memory_space<vmem>>, vector<1x1x128xf32>,
    %39 = arith.mulf %33, %21 : vector<32x128xf32>
    %cst_12 = arith.constant dense<0.000000e+00> : vector<128xf32>
    %40 = vector.multi_reduction <add>, %39, %cst_12 [0] : vector<32x128xf32> to vector<128xf32>
    %41 = vector.shape_cast %40 : vector<128xf32> to vector<1x128xf32>
    %c0_13 = arith.constant 0 : index
    %c0_14 = arith.constant 0 : index
    %c0_15 = arith.constant 0 : index
    %42 = vector.load %arg6[%c0_13, %c0_14, %c0_15] : memref<1x1x128xf32, #tpu.memory_space<vmem>>, vector<1x1x128xf32>
    %43 = vector.shape_cast %42 : vector<1x1x128xf32> to vector<1x128xf32>
    %44 = vector.shape_cast %41 : vector<1x128xf32> to vector<1x1x128xf32>
    tpu.vector_store %arg6[%c0_13, %c0_14, %c0_15], %44 {strides = array<i32>} : memref<1x1x128xf32, #tpu.memory_space<vmem>>, vector<1x1x128xf32>,
    return
  }
  func.func @transform_0(%arg0: i32) -> (i32, i32) {
    %c0_i32 = arith.constant 0 : i32
    %c0_i32_0 = arith.constant 0 : i32
    return %arg0, %c0_i32 : i32, i32
  }
  func.func @transform_1(%arg0: i32) -> (i32, i32) {
    %c0_i32 = arith.constant 0 : i32
    %c0_i32_0 = arith.constant 0 : i32
    %c0_i32_1 = arith.constant 0 : i32
    return %c0_i32, %c0_i32_0 : i32, i32
  }
  func.func @transform_2(%arg0: i32) -> (i32, i32) {
    %c0_i32 = arith.constant 0 : i32
    %c0_i32_0 = arith.constant 0 : i32
    %c0_i32_1 = arith.constant 0 : i32
    return %c0_i32, %c0_i32_0 : i32, i32
  }
  func.func @transform_3(%arg0: i32) -> (i32, i32) {
    %c0_i32 = arith.constant 0 : i32
    %c0_i32_0 = arith.constant 0 : i32
    return %arg0, %c0_i32 : i32, i32
  }
  func.func @transform_4(%arg0: i32) -> (i32, i32, i32) {
    %c0_i32 = arith.constant 0 : i32
    %c0_i32_0 = arith.constant 0 : i32
    %c0_i32_1 = arith.constant 0 : i32
    return %arg0, %c0_i32, %c0_i32_0 : i32, i32, i32
  }
  func.func @transform_5(%arg0: i32) -> (i32, i32, i32) {
    %c0_i32 = arith.constant 0 : i32
    %c0_i32_0 = arith.constant 0 : i32
    %c0_i32_1 = arith.constant 0 : i32
    return %arg0, %c0_i32, %c0_i32_0 : i32, i32, i32
  }
}

</mosaic_0001>

<bundles_post_ra>
// kernel: tpu_custom_call.1
= control target key start
LH: loop header
LB: loop body
LE: loop exit
PB: predicated region body
PF: predicated region fallthrough
CT: control target
= control target key end

     0   :  { %6 = vsyncpa [#allocation3], 0  ;;  %s481_s0 = inlined_call_operand.hbm [shape: f32[8,128], index: 0, kind: input, shape index: {}]   ;;  %s482_s1 = inlined_call_operand.hbm [shape: f32[16,128], index: 1, kind: output, shape index: {}]  }
   0x1   :  { %7 = vsyncpa [#allocation4], 0 }
   0x2   :  { %9 = vsyncpa [#allocation4 + $0x1], 0  ;;  %s351_s6 = smov 0   ;;  %s353_s7 = smov 0  }
   0x3   :  { %s355_s8 = smov 0   ;;  %s357_s9 = smov 0  }
   0x4 LB: > { %s372_s10 = sadd.s32 4294967295, %s337_s9   ;;  %s183_s11 = sadd.s32 4294967294, %s337_s9   ;;  %s337_s9 = sphi %s357_s9, %s498_s9   ;;  %s333_s8 = sphi %s355_s8, %s497_s8   ;;  %s329_s7 = sphi %s353_s7, %s496_s7   ;;  %s325_s6 = sphi %s351_s6, %s495_s6  }
   0x5   : > { %s376_s12 = sadd.s32 1, %s337_s9   ;;  %s43_s13 = sadd.s32 1, %s333_s8 }
   0x6   : > { %s40_s14 = ssub.s32 %s337_s9, %s376_s12  ;;  %p53_p0 = scmp.ne.s32.totalorder %s333_s8, %s329_s7 }
   0x7   : > { %p41_p1 = scmp.eq.s32.totalorder %s40_s14, 0  ;;  %p54_p2 = scmp.eq.s32.totalorder %s372_s10, 1 }
   0x8   : > { %p59_p3 = scmp.ne.s32.totalorder %s329_s7, %s325_s6  ;;  %p60_p4 = scmp.eq.s32.totalorder %s183_s11, 1 }
   0x9   : > { %s387_s15 = scalar_select %p41_p1, %s333_s8, %s43_s13  }
   0xa   : > { %p389_p5 = por %p54_p2, %p53_p0  ;;  %p393_p6 = por %p60_p4, %p59_p3 }
   0xb   : > { %p184_p7 = scmp.ge.s32.totalorder %s337_s9, 1  ;;  %p67_p8 = scmp.lt.s32.totalorder %s337_s9, 3 }
   0xc   : > { %s486_s16 = scalar_select %p389_p5, 1, 0 }
   0xd   : > { %s487_s17 = scalar_select %p393_p6, 1, 0 }
   0xe   : > { %p483_p9 = scmp.eq.s32.totalorder %s372_s10, 0  ;;  %p400_p10 = pnand %p184_p7, %p67_p8 }
   0xf   : > { %s339_s19 = smov [#allocation2]   ;;  %s243_s24 = scalar_lea.hbm %s481_s0, 128 }
  0x10   : > { %s488_s18 = scalar_select %p400_p10, 1, 0 }
  0x11   : > { %s80_s20 = sshll.u32 %s339_s19, 4  ;;  %p199_p11 = pneg %p400_p10  ;;  %s81_s20 = int_to_ptr.vmem [resolvable:$true] %s80_s20 }
  0x12   : > { %p244_p13 = scmp.ne.s32.totalorder %s481_s0, %s243_s24  ;;  %p250_p3 = scmp.lt.u32.totalorder %s243_s24, %s481_s0 }
  0x13   : > { %p408_p12 = pnand %p483_p9, %p199_p11 }
  0x15   : > { %p245_p0 = pneg %p408_p12 }
  0x17   : > { %p246_p1 = pnand %p245_p0, %p244_p13 }
  0x19   : > { %p247_p2 = pneg %p246_p1 }
  0x1b   : > { %p252_p4 = pnand %p250_p3, %p247_p2 }
  0x1d   : > { %255 = shalt.err (!%p252_p4)
}
  0x1e   : > { %s256_s29 = scalar_lea.vmem %s81_s20, 128  ;;  %p264_p9 = scmp.lt.s32.totalorder %s81_s20, %s81_s20 }
  0x1f   : > { %p257_p7 = scmp.ne.s32.totalorder %s81_s20, %s256_s29  ;;  %p265_p6 = scmp.lt.s32.totalorder %s256_s29, %s256_s29 }
  0x21   : > { %p259_p8 = pnand %p257_p7, %p245_p0  ;;  %p266_p5 = por %p265_p6, %p264_p9 }
  0x23   : > { %p260_p11 = pneg %p259_p8 }
  0x25   : > { %p267_p10 = pnand %p266_p5, %p260_p11 }
  0x27   : > { %270 = shalt.err (!%p267_p10)
}
  0x28   : > { %202 = dma.hbm_to_vmem [thread:$0]  (!%p408_p12), %s481_s0, 128, %s81_s20, [#allocation3]  }
  0x29   : > { %p490_p13 = scmp.ne.s32.totalorder %s488_s18, 0 }
  0x2a   : > { %p491_p1 = scmp.eq.s32.totalorder (!%p490_p13), %s372_s10, 0 }
  0x2b   : > { %93 = sbr.rel (%p490_p13) target bundleno = 77 (0x4d), region = 24 }
  0x32   : > { %316 = dma.done.wait (%p491_p1), [#allocation3], 128   ;;  %p492_p0 = pmov %p491_p1 }
  0x33   : > { %s105_s3 = sand.u32 1, %s329_s7   ;;  %s190_s13 = sshll.u32 %s372_s10, 7  ;;  %v108_v0 = vld [vmem:[#allocation2] sm:$0xff] }
  0x34   : > { %318 = vsyncadd (%p492_p0), [#allocation3], 4294967168  ;;  %s188_s4 = sshll.u32 %s105_s3, 3  ;;  %s441_s18 = scalar_lea.hbm %s482_s1, %s190_s13 }
  0x35   : > { %s107_s5 = scalar_lea.vmem [#allocation5], %s188_s4  ;;  %s111_s20 = scalar_lea.sflag [#allocation4], %s105_s3 }
  0x36   : > { %s124_s11 = sshll.u32 %s107_s5, 4  ;;  %109 = vst [vmem:[%s107_s5] sm:$0xff] %v108_v0  ;;  %p493_p6 = scmp.ne.s32.totalorder %s486_s16, 0  ;;  %s436_s11 = int_to_ptr.vmem [resolvable:$true] %s124_s11 }
  0x37   : > { %s271_s21 = scalar_lea.vmem %s436_s11, 128  ;;  %s340_s22 = smov [#allocation5]  }
  0x38   : > { %p272_p5 = scmp.ne.s32.totalorder %s436_s11, %s271_s21  ;;  %s275_s10 = sshll.u32 %s340_s22, 4  ;;  %s276_s10 = int_to_ptr.vmem [resolvable:$false] %s275_s10 }
  0x39   : > { %s277_s23 = scalar_lea.vmem %s276_s10, 256  ;;  %p278_p12 = scmp.lt.s32.totalorder %s436_s11, %s276_s10 }
  0x3a   : > { %p273_p9 = pnand %p272_p5, %p493_p6  ;;  %p279_p2 = scmp.lt.s32.totalorder %s277_s23, %s271_s21 }
  0x3c   : > { %p274_p10 = pneg %p273_p9  ;;  %p280_p3 = por %p279_p2, %p278_p12 }
  0x3e   : > { %p281_p4 = pnand %p280_p3, %p274_p10 }
  0x40   : > { %284 = shalt.err (!%p281_p4)
}
  0x41   : > { %s285_s24 = scalar_lea.hbm %s441_s18, 128  ;;  %s289_s27 = scalar_lea.hbm %s482_s1, 256 }
  0x42   : > { %p286_p7 = scmp.ne.s32.totalorder %s441_s18, %s285_s24  ;;  %p290_p13 = scmp.lt.u32.totalorder %s441_s18, %s482_s1 }
  0x43   : > { %p291_p1 = scmp.lt.u32.totalorder %s289_s27, %s285_s24  ;;  %p293_p5 = scmp.lt.u32.totalorder %s285_s24, %s441_s18 }
  0x44   : > { %p287_p8 = pnand %p286_p7, %p493_p6 }
  0x45   : > { %p292_p0 = por %p291_p1, %p290_p13 }
  0x46   : > { %p288_p11 = pneg %p287_p8 }
  0x47   : > { %p294_p9 = por %p293_p5, %p292_p0 }
  0x49   : > { %p295_p10 = pnand %p294_p9, %p288_p11 }
  0x4b   : > { %298 = shalt.err (!%p295_p10)
}
  0x4c   : > { %197 = dma.vmem_to_hbm [thread:$0]  (%p493_p6), %s436_s11, 128, %s441_s18, %s111_s20  }
  0x4d PF: > { %p209_p12 = scmp.ge.s32.totalorder %s337_s9, 2  ;;  %s136_s30 = sand.u32 1, %s325_s6  }
  0x4e   : > { %p494_p2 = scmp.ne.s32.totalorder %s487_s17, 0  ;;  %s137_s2 = scalar_lea.sflag [#allocation4], %s136_s30 }
  0x50   : > { %p204_p3 = pnand %p209_p12, %p494_p2 }
  0x52   : > { %320 = dma.done.wait (!%p204_p3), %s137_s2, 128  }
  0x53   : > { %322 = vsyncadd (!%p204_p3), %s137_s2, 4294967168  ;;  %p12_p4 = scmp.ge.s32.totalorder %s376_s12, 4   ;;  %s495_s6 = smov %s329_s7 }
  0x54   : > { %s496_s7 = smov %s333_s8  ;;  %s497_s8 = smov %s387_s15 }
  0x55   : > { %s498_s9 = smov %s376_s12  ;;  %14 = sbr.rel (!%p12_p4) target bundleno = 4 (0x4), region = 61 }
  0x5c   :  { %142 = vsyncpa [#allocation3], 1 }
  0x5d   :  { %144 = vsyncpa [#allocation3 + $0x1], 1 }
  0x5e   :  { %145 = vsyncpa [#allocation4], 1 }
  0x5f   :  { %147 = vsyncpa [#allocation4 + $0x1], 1 }

// kernel: tpu_custom_call.1
= control target key start
LH: loop header
LB: loop body
LE: loop exit
PB: predicated region body
PF: predicated region fallthrough
CT: control target
= control target key end

     0   :  { %11 = vsyncpa [#allocation3], 0  ;;  %v339_v1 = vmov 1   ;;  %v340_v2 = vmov 0   ;;  %s439_s0 = inlined_call_operand.vmem [shape: f32[32,3], index: 0, kind: input, shape index: {}]   ;;  %s440_s1 = inlined_call_operand.vmem [shape: f32[3,128], index: 1, kind: input, shape index: {}]   ;;  %s441_s2 = inlined_call_operand.vmem [shape: f32[1,128], index: 2, kind: input, shape index: {}]   ;;  %s442_s3 = inlined_call_operand.hbm [shape: bf16[32,128], index: 3, kind: output, shape index: {0}]   ;;  %s443_s4 = inlined_call_operand.hbm [shape: f32[1,1,128], index: 4, kind: output, shape index: {1}]   ;;  %s444_s5 = inlined_call_operand.hbm [shape: f32[1,1,128], index: 5, kind: output, shape index: {2}]  }
   0x1   :  { %v19_v0 = vld [vmem:[%s439_s0] sm:$0xff]  ;;  %262 = vset.pattern.permute.xlu1 %v339_v1  ;;  %261 = vset.pattern.permute.xlu0 %v340_v2 }
   0x2   :  { %12 = vsyncpa [#allocation5], 0  ;;  %53 = vperm.xlu1 %262, %v19_v0   ;;  %26 = vperm.xlu0 %261, %v19_v0   ;;  %v20_v3 = vld [vmem:[%s439_s0 + $0x8] sm:$0xff]  ;;  %v21_v4 = vld [vmem:[%s439_s0 + $0x10] sm:$0xff]  ;;  %v341_v5 = vmov 2   ;;  %v44_v7 = vlaneseq }
   0x3   :  { %v22_v6 = vld [vmem:[%s439_s0 + $0x18] sm:$0xff]  ;;  %v23_v13 = vld [vmem:[%s440_s1] sm:$0x7] }
   0x4   :  { %v45_v8 = vshrl.u32 %v44_v7, 7  ;;  %v233_v32 = vld [vmem:[%s441_s2] ss:$0 sm:$0xff]  ;;  %s342_s2 = smov [#allocation2]  }
   0x5   :  { %s195_s28 = sshll.u32 %s342_s2, 4  ;;  %s196_s28 = int_to_ptr.vmem [resolvable:$true] %s195_s28 }
   0x6   :  { %57 = vperm.xlu1 %262, %v20_v3   ;;  %31 = vperm.xlu0 %261, %v20_v3   ;;  %v70_v11 = vsub.s32 1, %v45_v8  ;;  %v46_v12 = vsub.s32 0, %v45_v8  ;;  %v98_v16 = vsub.s32 2, %v45_v8  ;;  %s269_s29 = scalar_lea.vmem %s196_s28, 256  ;;  %p274_p1 = scmp.lt.s32.totalorder %s196_s28, %s196_s28 }
   0x7   :  { %p270_p0 = scmp.ne.s32.totalorder %s196_s28, %s269_s29  ;;  %p275_p2 = scmp.lt.s32.totalorder %s269_s29, %s269_s29 }
   0x8   :  { %v71_v17 = vrot.slane %v23_v13, %v70_v11  ;;  %v47_v18 = vrot.slane %v23_v13, %v46_v12  ;;  %v99_v21 = vrot.slane %v23_v13, %v98_v16 }
   0x9   :  { %p276_p3 = por %p275_p2, %p274_p1 }
   0xa   :  { %61 = vperm.xlu1 %262, %v21_v4   ;;  %36 = vperm.xlu0 %261, %v21_v4  }
   0xb   :  { %p277_p4 = pnand %p276_p3, %p270_p0 }
   0xe   :  { %264 = vset.pattern.permute.xlu1 %v341_v5  ;;  %263 = vset.pattern.permute.xlu0 %v341_v5 }
   0xf   :  { %85 = vperm.xlu1 %264, %v20_v3   ;;  %81 = vperm.xlu0 %263, %v19_v0  }
  0x13   :  { %265 = vset.pattern.permute.xlu1 %v340_v2  ;;  %266 = vset.pattern.permute.xlu0 %v339_v1 }
  0x14   :  { %41 = vperm.xlu1 %265, %v22_v6   ;;  %65 = vperm.xlu0 %266, %v22_v6  }
  0x18   :  { %267 = vset.pattern.permute.xlu1 %v341_v5  ;;  %268 = vset.pattern.permute.xlu0 %v341_v5 }
  0x19   :  { %89 = vperm.xlu1 %267, %v21_v4  }
  0x1d   :  { %93 = vperm.xlu1 %267, %v22_v6  }
  0x81   :  { %v54_v9 = vpop.permute.xlu1 %53  ;;  %v27_v10 = vpop.permute.xlu0 %26 }
  0x82   :  { %v72_v22 = vmul.f32 %v71_v17, %v54_v9  ;;  %v48_v23 = vmul.f32 %v47_v18, %v27_v10 }
  0x84   :  { %v76_v28 = vadd.f32 %v72_v22, %v48_v23 }
  0x85   :  { %v58_v14 = vpop.permute.xlu1 %57  ;;  %v32_v15 = vpop.permute.xlu0 %31 }
  0x86   :  { %v73_v24 = vmul.f32 %v71_v17, %v58_v14  ;;  %v49_v25 = vmul.f32 %v47_v18, %v32_v15 }
  0x88   :  { %v77_v29 = vadd.f32 %v73_v24, %v49_v25 }
  0x89   :  { %v62_v19 = vpop.permute.xlu1 %61  ;;  %v37_v20 = vpop.permute.xlu0 %36 }
  0x8a   :  { %v74_v38 = vmul.f32 %v71_v17, %v62_v19  ;;  %v50_v39 = vmul.f32 %v47_v18, %v37_v20 }
  0x8c   :  { %v78_v43 = vadd.f32 %v74_v38, %v50_v39 }
  0x8e   :  { %v86_v26 = vpop.permute.xlu1 %85  ;;  %v82_v27 = vpop.permute.xlu0 %81 }
  0x8f   :  { %v101_v30 = vmul.f32 %v99_v21, %v86_v26  ;;  %v100_v31 = vmul.f32 %v99_v21, %v82_v27 }
  0x91   :  { %v105_v33 = vadd.f32 %v101_v30, %v77_v29  ;;  %v104_v34 = vadd.f32 %v100_v31, %v76_v28 }
  0x93   :  { %v116_v35 = vadd.f32 %v233_v32, %v105_v33  ;;  %v115_v36 = vadd.f32 %v233_v32, %v104_v34  ;;  %v42_v37 = vpop.permute.xlu1 %41  ;;  %v66_v41 = vpop.permute.xlu0 %65 }
  0x94   :  { %v51_v44 = vmul.f32 %v47_v18, %v42_v37  ;;  %v75_v45 = vmul.f32 %v71_v17, %v66_v41 }
  0x95   :  { %v245_v40 = vpack.c.bf16 %v116_v35, %v115_v36  ;;  %v177_v48 = vmul.f32 %v116_v35, %v116_v35  ;;  %v176_v50 = vmul.f32 %v115_v36, %v115_v36  ;;  %v166_v54 = vadd.f32 %v116_v35, %v115_v36 }
  0x96   :  { %v79_v51 = vadd.f32 %v75_v45, %v51_v44 }
  0x97   :  { %246 = vst [vmem:[#allocation2] sm:$0xff] %v245_v40   ;;  %v180_v57 = vadd.f32 %v177_v48, %v176_v50 }
  0x98   :  { %v90_v42 = vpop.permute.xlu1 %89 }
  0x99   :  { %v102_v46 = vmul.f32 %v99_v21, %v90_v42 }
  0x9b   :  { %v106_v47 = vadd.f32 %v102_v46, %v78_v43 }
  0x9c   :  { %v94_v49 = vpop.permute.xlu1 %93 }
  0x9d   :  { %v117_v52 = vadd.f32 %v233_v32, %v106_v47  ;;  %v103_v53 = vmul.f32 %v99_v21, %v94_v49 }
  0x9f   :  { %v178_v55 = vmul.f32 %v117_v52, %v117_v52  ;;  %v107_v56 = vadd.f32 %v103_v53, %v79_v51  ;;  %v167_v58 = vadd.f32 %v166_v54, %v117_v52 }
  0xa1   :  { %v118_v59 = vadd.f32 %v233_v32, %v107_v56  ;;  %v181_v63 = vadd.f32 %v180_v57, %v178_v55 }
  0xa3   :  { %v179_v60 = vmul.f32 %v118_v59, %v118_v59  ;;  %v168_v61 = vadd.f32 %v167_v58, %v118_v59  ;;  %v250_v62 = vpack.c.bf16 %v118_v59, %v117_v52 }
  0xa5   :  { %v169_v0 = vrot.slane %v168_v61, 4  ;;  %252 = vst [vmem:[#allocation2 + $0x8] sm:$0xff] %v250_v62   ;;  %v182_v1 = vadd.f32 %v181_v63, %v179_v60 }
  0xa6   :  { %280 = shalt.err (!%p277_p4)
}
  0xa7   :  { %s281_s7 = scalar_lea.hbm %s442_s3, 256 }
  0xa8   :  { %p282_p5 = scmp.ne.s32.totalorder %s442_s3, %s281_s7  ;;  %p285_p6 = scmp.lt.u32.totalorder %s281_s7, %s442_s3 }
  0xaa   :  { %p287_p7 = pnand %p285_p6, %p282_p5 }
  0xac   :  { %290 = shalt.err (!%p287_p7)
}
  0xad   :  { %s343_s12 = smov 64   ;;  %s344_s13 = smov 4   ;;  %v170_v2 = vadd.f32 %v169_v0, %v168_v61  ;;  %v183_v3 = vrot.slane %v182_v1, 4 }
  0xae   :  { %201 = dma.vmem_to_hbm [thread:$0]  %s196_s28, 256, %s442_s3, [#allocation3], %s343_s12, %s343_s12, %s344_s13  }
  0xaf   :  { %v171_v4 = vrot.slane %v170_v2, 2  ;;  %v184_v5 = vadd.f32 %v183_v3, %v182_v1  ;;  %s345_s16 = smov [#allocation4]   ;;  %s346_s18 = smov [#allocation6]  }
  0xb0   :  { %s208_s17 = sshll.u32 %s345_s16, 4  ;;  %s218_s19 = sshll.u32 %s346_s18, 4  ;;  %s209_s17 = int_to_ptr.vmem [resolvable:$true] %s208_s17  ;;  %s407_s19 = int_to_ptr.vmem [resolvable:$true] %s218_s19 }
  0xb1   :  { %v172_v6 = vadd.f32 %v171_v4, %v170_v2  ;;  %v185_v7 = vrot.slane %v184_v5, 2  ;;  %s291_s3 = scalar_lea.vmem %s209_s17, 16  ;;  %s295_s20 = scalar_lea.vmem %s209_s17, 32 }
  0xb2   :  { %p292_p8 = scmp.ne.s32.totalorder %s209_s17, %s291_s3  ;;  %p296_p9 = scmp.lt.s32.totalorder %s209_s17, %s209_s17 }
  0xb3   :  { %v173_v8 = vrot.slane %v172_v6, 1  ;;  %v186_v9 = vadd.f32 %v185_v7, %v184_v5  ;;  %p297_p10 = scmp.lt.s32.totalorder %s295_s20, %s291_s3 }
  0xb5   :  { %v174_v10 = vadd.f32 %v173_v8, %v172_v6  ;;  %v187_v11 = vrot.slane %v186_v9, 1  ;;  %p298_p11 = por %p297_p10, %p296_p9 }
  0xb7   :  { %175 = vst [vmem:[#allocation4] sm:$0x1] %v174_v10  ;;  %v188_v12 = vadd.f32 %v187_v11, %v186_v9  ;;  %p299_p12 = pnand %p298_p11, %p292_p8 }
  0xb9   :  { %302 = shalt.err (!%p299_p12)
}
  0xba   :  { %s303_s23 = scalar_lea.hbm %s443_s4, 16 }
  0xbb   :  { %p304_p13 = scmp.ne.s32.totalorder %s443_s4, %s303_s23  ;;  %p307_p0 = scmp.lt.u32.totalorder %s303_s23, %s443_s4 }
  0xbd   :  { %p309_p1 = pnand %p307_p0, %p304_p13 }
  0xbf   :  { %312 = shalt.err (!%p309_p1)
}
  0xc0   :  { %211 = dma.vmem_to_hbm [thread:$0]  %s209_s17, 16, %s443_s4, [#allocation5]   ;;  %189 = vst [vmem:[#allocation6] sm:$0x1] %v188_v12 }
  0xc1   :  { %s313_s2 = scalar_lea.vmem %s407_s19, 16  ;;  %s317_s28 = scalar_lea.vmem %s407_s19, 32 }
  0xc2   :  { %p314_p2 = scmp.ne.s32.totalorder %s407_s19, %s313_s2  ;;  %p318_p3 = scmp.lt.s32.totalorder %s407_s19, %s407_s19 }
  0xc3   :  { %p319_p4 = scmp.lt.s32.totalorder %s317_s28, %s313_s2 }
  0xc5   :  { %p320_p5 = por %p319_p4, %p318_p3 }
  0xc7   :  { %p321_p6 = pnand %p320_p5, %p314_p2 }
  0xc9   :  { %324 = shalt.err (!%p321_p6)
}
  0xca   :  { %s325_s6 = scalar_lea.hbm %s444_s5, 16 }
  0xcb   :  { %p326_p7 = scmp.ne.s32.totalorder %s444_s5, %s325_s6  ;;  %p329_p8 = scmp.lt.u32.totalorder %s325_s6, %s444_s5 }
  0xcd   :  { %p331_p9 = pnand %p329_p8, %p326_p7 }
  0xcf   :  { %334 = shalt.err (!%p331_p9)
}
  0xd0   :  { %221 = dma.vmem_to_hbm [thread:$0]  %s407_s19, 16, %s444_s5, [#allocation5]  }
  0xd1   :  { %335 = dma.done.wait [#allocation3], 256  }
  0xd2   :  { %336 = vsyncadd [#allocation3], 4294967040 }
  0xd3   :  { %337 = dma.done.wait [#allocation5], 32  }
  0xd4   :  { %338 = vsyncadd [#allocation5], 4294967264 }
  0xd5   :  { %231 = vsyncpa [#allocation3], 1 }
  0xd6   :  { %232 = vsyncpa [#allocation5], 1 }

</bundles_post_ra>
